<compile_context>
chip_gen: v6e
topology: v6e:2x2x1
jax: 0.10.0
libtpu: 0.0.40
codegen_flags: <defaults>
</compile_context>

<pallas_src>
import math

import jax
import jax.numpy as jnp
from jax.experimental import pallas as pl
from jax.experimental.pallas import tpu as pltpu


def _gelu_tanh(x):
    # GELU with tanh approximation (matches nn.GELU(approximate='tanh')).
    c = math.sqrt(2.0 / math.pi)
    return 0.5 * x * (1.0 + jnp.tanh(c * (x + 0.044715 * x * x * x)))


def _round_up(x, m):
    return ((x + m - 1) // m) * m


def _pick_hidden_tile(H, block_h):
    """Hidden-dim tile: largest divisor of H that is <= block_h and a multiple
    of 256 (fills the 256x256 MXU on v6e/v7x), else a multiple of 128 (fine
    for v5e's 128x128 MXU).  Returns H (fully resident weights) when
    block_h is None / >= H or no aligned divisor exists."""
    if block_h is None or block_h >= H:
        return H
    for align in (256, 128):
        best = 0
        cand = align
        while cand <= block_h:
            if H % cand == 0:
                best = cand
            cand += align
        if best:
            return best
    return H


def mlp_kernel_resident(x_ref, w1_ref, b1_ref, w2_ref, b2_ref, o_ref):
    """Fused MLP for one (tm, C) row tile with fully resident weights."""
    h = jnp.dot(x_ref[...], w1_ref[...], preferred_element_type=jnp.float32)
    h = _gelu_tanh(h + b1_ref[...].astype(jnp.float32))
    y = jnp.dot(h.astype(w2_ref.dtype), w2_ref[...],
                preferred_element_type=jnp.float32)
    o_ref[...] = (y + b2_ref[...].astype(jnp.float32)).astype(o_ref.dtype)


def mlp_kernel_stream(x_ref, w1_ref, b1_ref, w2_ref, b2_ref, o_ref, acc_ref):
    """One (tm, th) step of the fused MLP with the hidden dim as a reduction.

    Grid = (M tiles, H tiles).  Each k-step computes
    gelu(x_tile @ w1[:, th] + b1[th]) and accumulates its contribution
    through w2[th, :] into a (tm, C) f32 accumulator held in VMEM.
    """
    k = pl.program_id(1)

    @pl.when(k == 0)
    def _():
        acc_ref[...] = jnp.zeros_like(acc_ref)

    # (tm, C) @ (C, th) -> f32 (tm, th) on the MXU.
    h = jnp.dot(x_ref[...], w1_ref[...], preferred_element_type=jnp.float32)
    h = _gelu_tanh(h + b1_ref[...].astype(jnp.float32))
    acc_ref[...] += jnp.dot(h.astype(w2_ref.dtype), w2_ref[...],
                            preferred_element_type=jnp.float32)

    @pl.when(k == pl.num_programs(1) - 1)
    def _():
        o_ref[...] = (acc_ref[...] + b2_ref[...].astype(jnp.float32)
                      ).astype(o_ref.dtype)


def mlp_forward(x, w1, b1, w2, b2, *, block_m=None, block_h=None,
                single_buffer_resident_weights=True):
    """Fused MLP forward: gelu_tanh(x @ w1 + b1) @ w2 + b2.

    x: (B, T, C); w1: (C, H); b1: (H,); w2: (H, C); b2: (C,)   (H = 4*C)
    Weights are (in_features, out_features), i.e. transposed vs nn.Linear.weight.

    block_m: rows of x per grid step (multiple of 8).  Default: 512 when the
        weights are resident, 768 when streaming.  Ridge guidance when
        streaming (2*C*th weight bytes per 4*tm*C*th flops):
        v5e needs tm >= ~256, v7x ~384-640 (2 TCs share HBM), v6e ~768.
    block_h: hidden-dim tile (multiple of 128/256).  None keeps the full
        hidden dim so both weight matrices stay resident in VMEM (best on
        v5e/v6e's 128 MiB and whenever they fit in v7x's 64 MiB); set it to
        stream the weights for very large embeddings.
    """
    B, T, C = x.shape
    H = w1.shape[1]
    M = B * T
    x2d = x.reshape(M, C)

    th = _pick_hidden_tile(H, block_h)
    streaming = th < H
    n_k = H // th

    if block_m is None:
        block_m = 768 if streaming else 512
    tm = max(8, min(_round_up(block_m, 8), _round_up(M, 8)))
    grid_m = pl.cdiv(M, tm)

    b1_2d = b1.reshape(1, H)
    b2_2d = b2.reshape(1, C)

    # --- advisory cost hint so XLA can schedule surrounding work -----------
    weight_bytes = (w1.size * w1.dtype.itemsize + b1.size * b1.dtype.itemsize
                    + w2.size * w2.dtype.itemsize + b2.size * b2.dtype.itemsize)
    weight_passes = grid_m if streaming else 1  # weights re-streamed per M tile
    cost = pl.CostEstimate(
        flops=4 * M * C * H,                 # two matmuls, 2*M*C*H flops each
        transcendentals=M * H,               # one tanh per hidden activation
        bytes_accessed=int(2 * M * C * x.dtype.itemsize
                           + weight_passes * weight_bytes),
    )

    # --- VMEM budget (conservative: double-buffered everything) ------------
    itm_x = x.dtype.itemsize
    itm_w = w1.dtype.itemsize
    vmem_est = (
        2 * tm * C * itm_x                       # x tile (double-buffered)
        + 2 * tm * C * itm_x                     # out tile (double-buffered)
        + 2 * (C * th + th * C) * itm_w          # w1 / w2 slices
        + 2 * (th + C) * itm_w                   # b1 / b2 slices
        + (tm * C * 4 if streaming else 0)       # f32 accumulator scratch
        + 3 * tm * th * 4                        # f32 hidden + GELU temporaries
        + tm * th * itm_w                        # downcast copy of h (2nd MXU pass)
    )
    try:
        vmem_cap = int(getattr(pltpu.get_tpu_info(), "vmem_capacity_bytes",
                               64 * 1024 * 1024))
    except Exception:
        vmem_cap = 64 * 1024 * 1024              # v7x per-TC capacity (smallest)
    if vmem_est <= 12 * 1024 * 1024:
        vmem_limit = None                        # default scoped limit is enough
    else:
        vmem_limit = int(min(max(vmem_est * 3 // 2, 32 * 1024 * 1024), vmem_cap))

    def _call(single_buffer_weights):
        if streaming:
            grid = (grid_m, n_k)
            in_specs = [
                pl.BlockSpec((tm, C), lambda i, k: (i, 0)),   # x tile
                pl.BlockSpec((C, th), lambda i, k: (0, k)),   # w1 slice
                pl.BlockSpec((1, th), lambda i, k: (0, k)),   # b1 slice
                pl.BlockSpec((th, C), lambda i, k: (k, 0)),   # w2 slice
                pl.BlockSpec((1, C), lambda i, k: (0, 0)),    # b2 (resident)
            ]
            out_spec = pl.BlockSpec((tm, C), lambda i, k: (i, 0))
            scratch = [pltpu.VMEM((tm, C), jnp.float32)]
            kernel = mlp_kernel_stream
            dims = ("parallel", "arbitrary")
        else:
            if single_buffer_weights:
                # Constant index maps -> one buffer is enough; halves the
                # resident-weight VMEM footprint (important on v7x's 64 MiB).
                def wspec(shape, imap):
                    return pl.BlockSpec(shape, imap,
                                        pipeline_mode=pl.Buffered(1))
            else:
                def wspec(shape, imap):
                    return pl.BlockSpec(shape, imap)
            grid = (grid_m,)
            in_specs = [
                pl.BlockSpec((tm, C), lambda i: (i, 0)),      # x tile
                wspec((C, H), lambda i: (0, 0)),              # w1 (resident)
                wspec((1, H), lambda i: (0, 0)),              # b1 (resident)
                wspec((H, C), lambda i: (0, 0)),              # w2 (resident)
                wspec((1, C), lambda i: (0, 0)),              # b2 (resident)
            ]
            out_spec = pl.BlockSpec((tm, C), lambda i: (i, 0))
            scratch = []
            kernel = mlp_kernel_resident
            dims = ("parallel",)

        return pl.pallas_call(
            kernel,
            out_shape=jax.ShapeDtypeStruct((M, C), x.dtype),
            grid_spec=pltpu.PrefetchScalarGridSpec(
                num_scalar_prefetch=0,
                grid=grid,
                in_specs=in_specs,
                out_specs=out_spec,
                scratch_shapes=scratch,
            ),
            compiler_params=pltpu.CompilerParams(
                # M tiles are independent ("parallel" -> sharded across v7x's
                # two TensorCores); hidden axis is a reduction ("arbitrary").
                dimension_semantics=dims,
                vmem_limit_bytes=vmem_limit,
            ),
            cost_estimate=cost,
        )(x2d, w1, b1_2d, w2, b2_2d)

    use_single = single_buffer_resident_weights and not streaming
    if use_single:
        try:
            out = _call(True)
        except Exception:
            # pl.Buffered(1) not accepted by this JAX/Mosaic build; fall back
            # to default double-buffered weight blocks (correct, just uses
            # more VMEM).
            out = _call(False)
    else:
        out = _call(False)

    return out.reshape(B, T, C)


def reference_mlp(x, w1, b1, w2, b2):
    hp = jax.lax.Precision.HIGHEST
    h = jnp.einsum("btc,ch->bth", x, w1, precision=hp) + b1
    h = _gelu_tanh(h)
    return jnp.einsum("bth,hc->btc", h, w2, precision=hp) + b2


if __name__ == "__main__":
    key = jax.random.PRNGKey(0)
    kx, k1, k2, k3, k4, kx2, k5, k6, k7, k8 = jax.random.split(key, 10)

    # --- Config 1: tiny nanoGPT-like shape, f32, weights fully resident ----
    B, T, C = 2, 8, 32
    H = 4 * C
    x = jax.random.normal(kx, (B, T, C), dtype=jnp.float32)
    # Deterministic PyTorch-Linear-like uniform init, stored (in, out).
    w1 = jax.random.uniform(k1, (C, H), jnp.float32, -1.0, 1.0) / math.sqrt(C)
    b1 = jax.random.uniform(k2, (H,), jnp.float32, -1.0, 1.0) / math.sqrt(C)
    w2 = jax.random.uniform(k3, (H, C), jnp.float32, -1.0, 1.0) / math.sqrt(H)
    b2 = jax.random.uniform(k4, (C,), jnp.float32, -1.0, 1.0) / math.sqrt(H)

    y = mlp_forward(x, w1, b1, w2, b2)
    jax.block_until_ready(y)
    y_ref = reference_mlp(x, w1, b1, w2, b2)
    assert y.shape == (B, T, C)
    assert jnp.allclose(y, y_ref, atol=1e-4, rtol=1e-4), "f32 mismatch (config 1)"

    # --- Config 2: exercises M tiling + hidden-dim reduction streaming -----
    B2, T2, C2 = 2, 64, 256
    H2 = 4 * C2
    x2 = jax.random.normal(kx2, (B2, T2, C2), dtype=jnp.float32)
    w1b = jax.random.uniform(k5, (C2, H2), jnp.float32, -1.0, 1.0) / math.sqrt(C2)
    b1b = jax.random.uniform(k6, (H2,), jnp.float32, -1.0, 1.0) / math.sqrt(C2)
    w2b = jax.random.uniform(k7, (H2, C2), jnp.float32, -1.0, 1.0) / math.sqrt(H2)
    b2b = jax.random.uniform(k8, (C2,), jnp.float32, -1.0, 1.0) / math.sqrt(H2)

    y2 = mlp_forward(x2, w1b, b1b, w2b, b2b, block_m=64, block_h=256)
    jax.block_until_ready(y2)
    y2_ref = reference_mlp(x2, w1b, b1b, w2b, b2b)
    assert y2.shape == (B2, T2, C2)
    assert jnp.allclose(y2, y2_ref, atol=1e-4, rtol=1e-4), "f32 mismatch (config 2)"

    # --- Config 3: bf16 weights/activations (MXU-native), f32 accumulation -
    bf16 = jnp.bfloat16
    y3 = mlp_forward(x.astype(bf16), w1.astype(bf16), b1.astype(bf16),
                     w2.astype(bf16), b2.astype(bf16))
    jax.block_until_ready(y3)
    assert y3.dtype == bf16
    assert jnp.allclose(y3.astype(jnp.float32), y_ref, atol=1e-1, rtol=1e-1), \
        "bf16 mismatch (config 3)"

    print("KERNEL_OK")
</pallas_src>

<mosaic_0001>
module attributes {stable_mosaic.version = 11 : i64} {
  func.func @mlp_kernel_resident(%arg0: i32, %arg1: memref<16x32xf32, #tpu.memory_space<vmem>>, %arg2: memref<32x128xf32, #tpu.memory_space<vmem>>, %arg3: memref<1x128xf32, #tpu.memory_space<vmem>>, %arg4: memref<128x32xf32, #tpu.memory_space<vmem>>, %arg5: memref<1x32xf32, #tpu.memory_space<vmem>>, %arg6: memref<16x32xf32, #tpu.memory_space<vmem>>) attributes {dimension_semantics = [#tpu.dimension_semantics<parallel>], iteration_bounds = array<i64: 1>, scalar_prefetch = 0 : i64, scratch_operands = 0 : i64, tpu.core_type = #tpu.core_type<tc>, window_params = [{transform_indices = @transform_0, window_bounds = array<i64: 16, 32>}, {pipeline_mode = #tpu.pipeline_mode<synchronous>, transform_indices = @transform_1, window_bounds = array<i64: 32, 128>}, {pipeline_mode = #tpu.pipeline_mode<synchronous>, transform_indices = @transform_2, window_bounds = array<i64: 1, 128>}, {pipeline_mode = #tpu.pipeline_mode<synchronous>, transform_indices = @transform_3, window_bounds = array<i64: 128, 32>}, {pipeline_mode = #tpu.pipeline_mode<synchronous>, transform_indices = @transform_4, window_bounds = array<i64: 1, 32>}, {transform_indices = @transform_5, window_bounds = array<i64: 16, 32>}]} {
    %c0 = arith.constant 0 : index
    %c0_0 = arith.constant 0 : index
    %0 = vector.load %arg1[%c0, %c0_0] : memref<16x32xf32, #tpu.memory_space<vmem>>, vector<16x32xf32>
    %c0_1 = arith.constant 0 : index
    %c0_2 = arith.constant 0 : index
    %1 = vector.load %arg2[%c0_1, %c0_2] : memref<32x128xf32, #tpu.memory_space<vmem>>, vector<32x128xf32>
    %cst = arith.constant dense<0.000000e+00> : vector<16x128xf32>
    %2 = tpu.matmul %0, %1, %cst {dimension_numbers = #tpu.dot_dimension_numbers<[1], [0], [0], [1], [0, 0, 1, 1], [], []>} : vector<16x32xf32>, vector<32x128xf32>, vector<16x128xf32> -> vector<16x128xf32>
    %c0_3 = arith.constant 0 : index
    %c0_4 = arith.constant 0 : index
    %3 = vector.load %arg3[%c0_3, %c0_4] : memref<1x128xf32, #tpu.memory_space<vmem>>, vector<1x128xf32>
    %4 = vector.broadcast %3 : vector<1x128xf32> to vector<16x128xf32>
    %5 = arith.addf %2, %4 : vector<16x128xf32>
    %cst_5 = arith.constant 5.000000e-01 : f32
    %6 = vector.broadcast %cst_5 : f32 to vector<16x128xf32>
    %7 = arith.mulf %6, %5 : vector<16x128xf32>
    %cst_6 = arith.constant 4.471500e-02 : f32
    %8 = vector.broadcast %cst_6 : f32 to vector<16x128xf32>
    %9 = arith.mulf %8, %5 : vector<16x128xf32>
    %10 = arith.mulf %9, %5 : vector<16x128xf32>
    %11 = arith.mulf %10, %5 : vector<16x128xf32>
    %12 = arith.addf %5, %11 : vector<16x128xf32>
    %cst_7 = arith.constant 0.797884583 : f32
    %13 = vector.broadcast %cst_7 : f32 to vector<16x128xf32>
    %14 = arith.mulf %13, %12 : vector<16x128xf32>
    %15 = math.tanh %14 : vector<16x128xf32>
    %cst_8 = arith.constant 1.000000e+00 : f32
    %16 = vector.broadcast %cst_8 : f32 to vector<16x128xf32>
    %17 = arith.addf %16, %15 : vector<16x128xf32>
    %18 = arith.mulf %7, %17 : vector<16x128xf32>
    %c0_9 = arith.constant 0 : index
    %c0_10 = arith.constant 0 : index
    %19 = vector.load %arg4[%c0_9, %c0_10] : memref<128x32xf32, #tpu.memory_space<vmem>>, vector<128x32xf32>
    %cst_11 = arith.constant dense<0.000000e+00> : vector<16x32xf32>
    %20 = tpu.matmul %18, %19, %cst_11 {dimension_numbers = #tpu.dot_dimension_numbers<[1], [0], [0], [1], [0, 0, 1, 1], [], []>} : vector<16x128xf32>, vector<128x32xf32>, vector<16x32xf32> -> vector<16x32xf32>
    %c0_12 = arith.constant 0 : index
    %c0_13 = arith.constant 0 : index
    %21 = vector.load %arg5[%c0_12, %c0_13] : memref<1x32xf32, #tpu.memory_space<vmem>>, vector<1x32xf32>
    %22 = vector.broadcast %21 : vector<1x32xf32> to vector<16x32xf32>
    %23 = arith.addf %20, %22 : vector<16x32xf32>
    %c0_14 = arith.constant 0 : index
    %c0_15 = arith.constant 0 : index
    %24 = vector.load %arg6[%c0_14, %c0_15] : memref<16x32xf32, #tpu.memory_space<vmem>>, vector<16x32xf32>
    tpu.vector_store %arg6[%c0_14, %c0_15], %23 {strides = array<i32>} : memref<16x32xf32, #tpu.memory_space<vmem>>, vector<16x32xf32>,
    return
  }
  func.func @transform_0(%arg0: i32) -> (i32, i32) {
    %c0_i32 = arith.constant 0 : i32
    %c0_i32_0 = arith.constant 0 : i32
    return %arg0, %c0_i32 : i32, i32
  }
  func.func @transform_1(%arg0: i32) -> (i32, i32) {
    %c0_i32 = arith.constant 0 : i32
    %c0_i32_0 = arith.constant 0 : i32
    %c0_i32_1 = arith.constant 0 : i32
    return %c0_i32, %c0_i32_0 : i32, i32
  }
  func.func @transform_2(%arg0: i32) -> (i32, i32) {
    %c0_i32 = arith.constant 0 : i32
    %c0_i32_0 = arith.constant 0 : i32
    %c0_i32_1 = arith.constant 0 : i32
    return %c0_i32, %c0_i32_0 : i32, i32
  }
  func.func @transform_3(%arg0: i32) -> (i32, i32) {
    %c0_i32 = arith.constant 0 : i32
    %c0_i32_0 = arith.constant 0 : i32
    %c0_i32_1 = arith.constant 0 : i32
    return %c0_i32, %c0_i32_0 : i32, i32
  }
  func.func @transform_4(%arg0: i32) -> (i32, i32) {
    %c0_i32 = arith.constant 0 : i32
    %c0_i32_0 = arith.constant 0 : i32
    %c0_i32_1 = arith.constant 0 : i32
    return %c0_i32, %c0_i32_0 : i32, i32
  }
  func.func @transform_5(%arg0: i32) -> (i32, i32) {
    %c0_i32 = arith.constant 0 : i32
    %c0_i32_0 = arith.constant 0 : i32
    return %arg0, %c0_i32 : i32, i32
  }
}

module attributes {stable_mosaic.version = 11 : i64} {
  func.func @mlp_kernel_resident(%arg0: i32, %arg1: memref<16x32xf32, #tpu.memory_space<vmem>>, %arg2: memref<32x128xf32, #tpu.memory_space<vmem>>, %arg3: memref<1x128xf32, #tpu.memory_space<vmem>>, %arg4: memref<128x32xf32, #tpu.memory_space<vmem>>, %arg5: memref<1x32xf32, #tpu.memory_space<vmem>>, %arg6: memref<16x32xf32, #tpu.memory_space<vmem>>) attributes {dimension_semantics = [#tpu.dimension_semantics<parallel>], iteration_bounds = array<i64: 1>, scalar_prefetch = 0 : i64, scratch_operands = 0 : i64, tpu.core_type = #tpu.core_type<tc>, window_params = [{transform_indices = @transform_0, window_bounds = array<i64: 16, 32>}, {pipeline_mode = #tpu.pipeline_mode<synchronous>, transform_indices = @transform_1, window_bounds = array<i64: 32, 128>}, {pipeline_mode = #tpu.pipeline_mode<synchronous>, transform_indices = @transform_2, window_bounds = array<i64: 1, 128>}, {pipeline_mode = #tpu.pipeline_mode<synchronous>, transform_indices = @transform_3, window_bounds = array<i64: 128, 32>}, {pipeline_mode = #tpu.pipeline_mode<synchronous>, transform_indices = @transform_4, window_bounds = array<i64: 1, 32>}, {transform_indices = @transform_5, window_bounds = array<i64: 16, 32>}]} {
    %c0 = arith.constant 0 : index
    %c0_0 = arith.constant 0 : index
    %0 = vector.load %arg1[%c0, %c0_0] : memref<16x32xf32, #tpu.memory_space<vmem>>, vector<16x32xf32>
    %c0_1 = arith.constant 0 : index
    %c0_2 = arith.constant 0 : index
    %1 = vector.load %arg2[%c0_1, %c0_2] : memref<32x128xf32, #tpu.memory_space<vmem>>, vector<32x128xf32>
    %cst = arith.constant dense<0.000000e+00> : vector<16x128xf32>
    %2 = tpu.matmul %0, %1, %cst {dimension_numbers = #tpu.dot_dimension_numbers<[1], [0], [0], [1], [0, 0, 1, 1], [], []>} : vector<16x32xf32>, vector<32x128xf32>, vector<16x128xf32> -> vector<16x128xf32>
    %c0_3 = arith.constant 0 : index
    %c0_4 = arith.constant 0 : index
    %3 = vector.load %arg3[%c0_3, %c0_4] : memref<1x128xf32, #tpu.memory_space<vmem>>, vector<1x128xf32>
    %4 = vector.broadcast %3 : vector<1x128xf32> to vector<16x128xf32>
    %5 = arith.addf %2, %4 : vector<16x128xf32>
    %cst_5 = arith.constant 5.000000e-01 : f32
    %6 = vector.broadcast %cst_5 : f32 to vector<16x128xf32>
    %7 = arith.mulf %6, %5 : vector<16x128xf32>
    %cst_6 = arith.constant 4.471500e-02 : f32
    %8 = vector.broadcast %cst_6 : f32 to vector<16x128xf32>
    %9 = arith.mulf %8, %5 : vector<16x128xf32>
    %10 = arith.mulf %9, %5 : vector<16x128xf32>
    %11 = arith.mulf %10, %5 : vector<16x128xf32>
    %12 = arith.addf %5, %11 : vector<16x128xf32>
    %cst_7 = arith.constant 0.797884583 : f32
    %13 = vector.broadcast %cst_7 : f32 to vector<16x128xf32>
    %14 = arith.mulf %13, %12 : vector<16x128xf32>
    %15 = math.tanh %14 : vector<16x128xf32>
    %cst_8 = arith.constant 1.000000e+00 : f32
    %16 = vector.broadcast %cst_8 : f32 to vector<16x128xf32>
    %17 = arith.addf %16, %15 : vector<16x128xf32>
    %18 = arith.mulf %7, %17 : vector<16x128xf32>
    %c0_9 = arith.constant 0 : index
    %c0_10 = arith.constant 0 : index
    %19 = vector.load %arg4[%c0_9, %c0_10] : memref<128x32xf32, #tpu.memory_space<vmem>>, vector<128x32xf32>
    %cst_11 = arith.constant dense<0.000000e+00> : vector<16x32xf32>
    %20 = tpu.matmul %18, %19, %cst_11 {dimension_numbers = #tpu.dot_dimension_numbers<[1], [0], [0], [1], [0, 0, 1, 1], [], []>} : vector<16x128xf32>, vector<128x32xf32>, vector<16x32xf32> -> vector<16x32xf32>
    %c0_12 = arith.constant 0 : index
    %c0_13 = arith.constant 0 : index
    %21 = vector.load %arg5[%c0_12, %c0_13] : memref<1x32xf32, #tpu.memory_space<vmem>>, vector<1x32xf32>
    %22 = vector.broadcast %21 : vector<1x32xf32> to vector<16x32xf32>
    %23 = arith.addf %20, %22 : vector<16x32xf32>
    %c0_14 = arith.constant 0 : index
    %c0_15 = arith.constant 0 : index
    %24 = vector.load %arg6[%c0_14, %c0_15] : memref<16x32xf32, #tpu.memory_space<vmem>>, vector<16x32xf32>
    tpu.vector_store %arg6[%c0_14, %c0_15], %23 {strides = array<i32>} : memref<16x32xf32, #tpu.memory_space<vmem>>, vector<16x32xf32>,
    return
  }
  func.func @transform_0(%arg0: i32) -> (i32, i32) {
    %c0_i32 = arith.constant 0 : i32
    %c0_i32_0 = arith.constant 0 : i32
    return %arg0, %c0_i32 : i32, i32
  }
  func.func @transform_1(%arg0: i32) -> (i32, i32) {
    %c0_i32 = arith.constant 0 : i32
    %c0_i32_0 = arith.constant 0 : i32
    %c0_i32_1 = arith.constant 0 : i32
    return %c0_i32, %c0_i32_0 : i32, i32
  }
  func.func @transform_2(%arg0: i32) -> (i32, i32) {
    %c0_i32 = arith.constant 0 : i32
    %c0_i32_0 = arith.constant 0 : i32
    %c0_i32_1 = arith.constant 0 : i32
    return %c0_i32, %c0_i32_0 : i32, i32
  }
  func.func @transform_3(%arg0: i32) -> (i32, i32) {
    %c0_i32 = arith.constant 0 : i32
    %c0_i32_0 = arith.constant 0 : i32
    %c0_i32_1 = arith.constant 0 : i32
    return %c0_i32, %c0_i32_0 : i32, i32
  }
  func.func @transform_4(%arg0: i32) -> (i32, i32) {
    %c0_i32 = arith.constant 0 : i32
    %c0_i32_0 = arith.constant 0 : i32
    %c0_i32_1 = arith.constant 0 : i32
    return %c0_i32, %c0_i32_0 : i32, i32
  }
  func.func @transform_5(%arg0: i32) -> (i32, i32) {
    %c0_i32 = arith.constant 0 : i32
    %c0_i32_0 = arith.constant 0 : i32
    return %arg0, %c0_i32 : i32, i32
  }
}

</mosaic_0001>

<bundles_post_ra>
// kernel: tpu_custom_call.1
= control target key start
LH: loop header
LB: loop body
LE: loop exit
PB: predicated region body
PF: predicated region fallthrough
CT: control target
= control target key end

     0   :  { %vm34_vm0 = vcmask 261120   ;;  %s465_s0 = inlined_call_operand.vmem [shape: f32[16,32], index: 0, kind: input, shape index: {}]   ;;  %s466_s1 = inlined_call_operand.vmem [shape: f32[32,128], index: 1, kind: input, shape index: {}]   ;;  %s467_s2 = inlined_call_operand.vmem [shape: f32[1,128], index: 2, kind: input, shape index: {}]   ;;  %s468_s3 = inlined_call_operand.vmem [shape: f32[128,32], index: 3, kind: input, shape index: {}]   ;;  %s469_s4 = inlined_call_operand.vmem [shape: f32[1,32], index: 4, kind: input, shape index: {}]   ;;  %s470_s5 = inlined_call_operand.hbm [shape: f32[16,32], index: 5, kind: output, shape index: {}]  }
   0x1   :  { %v26_v0 = vld [vmem:[%s466_s1 + $0x18] sm:$0xff]  ;;  %v25_v1 = vld [vmem:[%s466_s1 + $0x10] sm:$0xff]  ;;  %v21_v2 = vld [vmem:[%s465_s0] sm:$0xff] }
   0x2   :  { %278 = vmatprep.subr.mxu0 %v26_v0  ;;  %v24_v3 = vld [vmem:[%s466_s1 + $0x8] sm:$0xff]  ;;  %286 = vmatprep.mubr.msk.f32.mxu0 %vm34_vm0, %v21_v2 }
   0x3   :  { %279 = vmatpush3.msra.mxu0 %v26_v0 }
   0x4   :  { %10 = vsyncpa [#allocation3], 0  ;;  %280 = vmatprep.subr.mxu0 %v25_v1  ;;  %v23_v4 = vld [vmem:[%s466_s1] sm:$0xff]  ;;  %v22_v5 = vld [vmem:[%s465_s0 + $0x8] sm:$0xff]  ;;  %s353_s10 = smov [#allocation2]  }
   0x5   :  { %281 = vmatpush3.msra.mxu0 %v25_v1  ;;  %v149_v6 = vld [vmem:[%s468_s3 + $0x78] sm:$0xff]  ;;  %v148_v7 = vld [vmem:[%s468_s3 + $0x70] sm:$0xff]  ;;  %v147_v8 = vld [vmem:[%s468_s3 + $0x68] sm:$0xff]  ;;  %s239_s11 = sshll.u32 %s353_s10, 4  ;;  %s240_s11 = int_to_ptr.vmem [resolvable:$true] %s239_s11 }
   0x6   :  { %282 = vmatprep.subr.mxu0 %v24_v3  ;;  %289 = vmatprep.subr.mxu1 %v149_v6  ;;  %v146_v9 = vld [vmem:[%s468_s3 + $0x60] sm:$0xff]  ;;  %v145_v10 = vld [vmem:[%s468_s3 + $0x58] sm:$0xff]  ;;  %v144_v11 = vld [vmem:[%s468_s3 + $0x50] sm:$0xff]  ;;  %s331_s12 = scalar_lea.vmem %s240_s11, 256  ;;  %p336_p1 = scmp.lt.s32.totalorder %s240_s11, %s240_s11 }
   0x7   :  { %283 = vmatpush3.msra.mxu0 %v24_v3  ;;  %290 = vmatpush3.msra.mxu1 %v149_v6  ;;  %v143_v12 = vld [vmem:[%s468_s3 + $0x48] sm:$0xff]  ;;  %v142_v13 = vld [vmem:[%s468_s3 + $0x40] sm:$0xff]  ;;  %v141_v14 = vld [vmem:[%s468_s3 + $0x38] sm:$0xff]  ;;  %p332_p0 = scmp.ne.s32.totalorder %s240_s11, %s331_s12  ;;  %p337_p2 = scmp.lt.s32.totalorder %s331_s12, %s331_s12 }
   0x8   :  { %284 = vmatprep.subr.mxu0 %v23_v4  ;;  %291 = vmatprep.subr.mxu1 %v148_v7  ;;  %v140_v15 = vld [vmem:[%s468_s3 + $0x30] sm:$0xff]  ;;  %v139_v16 = vld [vmem:[%s468_s3 + $0x28] sm:$0xff]  ;;  %v138_v17 = vld [vmem:[%s468_s3 + $0x20] sm:$0xff] }
   0x9   :  { %285 = vmatpush3.msra.mxu0 %v23_v4  ;;  %292 = vmatpush3.msra.mxu1 %v148_v7  ;;  %v137_v18 = vld [vmem:[%s468_s3 + $0x18] sm:$0xff]  ;;  %v136_v19 = vld [vmem:[%s468_s3 + $0x10] sm:$0xff]  ;;  %v135_v20 = vld [vmem:[%s468_s3 + $0x8] sm:$0xff]  ;;  %p338_p3 = por %p337_p2, %p336_p1 }
   0xa   :  { %287 = vmatmul.mubr.msk.f32.vlgmr.msra.gmra.mxu0 %vm34_vm0, %v22_v5  ;;  %293 = vmatprep.subr.mxu1 %v147_v8  ;;  %v134_v21 = vld [vmem:[%s468_s3] sm:$0xff] }
   0xb   :  { %294 = vmatpush3.msra.mxu1 %v147_v8  ;;  %v250_v22 = vld [vmem:[%s467_s2] ss:$0 sm:$0xff]  ;;  %p339_p4 = pnand %p338_p3, %p332_p0 }
   0xc   :  { %295 = vmatprep.subr.mxu1 %v146_v9  ;;  %v253_v45 = vld [vmem:[%s469_s4] ss:$0 sm:$0xff] }
   0xd   :  { %296 = vmatpush3.msra.mxu1 %v146_v9 }
   0xe   :  { %297 = vmatprep.subr.mxu1 %v145_v10 }
   0xf   :  { %298 = vmatpush3.msra.mxu1 %v145_v10 }
  0x10   :  { %299 = vmatprep.subr.mxu1 %v144_v11 }
  0x11   :  { %300 = vmatpush3.msra.mxu1 %v144_v11 }
  0x12   :  { %301 = vmatprep.subr.mxu1 %v143_v12 }
  0x13   :  { %302 = vmatpush3.msra.mxu1 %v143_v12 }
  0x14   :  { %303 = vmatprep.subr.mxu1 %v142_v13 }
  0x15   :  { %304 = vmatpush3.msra.mxu1 %v142_v13 }
  0x16   :  { %305 = vmatprep.subr.mxu1 %v141_v14 }
  0x17   :  { %306 = vmatpush3.msra.mxu1 %v141_v14 }
  0x18   :  { %307 = vmatprep.subr.mxu1 %v140_v15 }
  0x19   :  { %308 = vmatpush3.msra.mxu1 %v140_v15 }
  0x1a   :  { %309 = vmatprep.subr.mxu1 %v139_v16 }
  0x1b   :  { %310 = vmatpush3.msra.mxu1 %v139_v16 }
  0x1c   :  { %311 = vmatprep.subr.mxu1 %v138_v17 }
  0x1d   :  { %312 = vmatpush3.msra.mxu1 %v138_v17 }
  0x1e   :  { %313 = vmatprep.subr.mxu1 %v137_v18 }
  0x1f   :  { %314 = vmatpush3.msra.mxu1 %v137_v18 }
  0x20   :  { %315 = vmatprep.subr.mxu1 %v136_v19 }
  0x21   :  { %316 = vmatpush3.msra.mxu1 %v136_v19 }
  0x22   :  { %317 = vmatprep.subr.mxu1 %v135_v20 }
  0x23   :  { %318 = vmatpush3.msra.mxu1 %v135_v20 }
  0x24   :  { %319 = vmatprep.subr.mxu1 %v134_v21 }
  0x25   :  { %320 = vmatpush3.msra.mxu1 %v134_v21 }
  0xca   :  { %v288_v23 = vpop.f32.mrf.mxu0 }
  0xcb   :  { %v113_v24 = vadd.f32 %v288_v23, %v250_v22 }
  0xcc   :  { %v107_v25 = vpop.f32.mrf.mxu0 }
  0xcd   :  { %v119_v26 = vmul.f32 0.044715, %v113_v24  ;;  %v108_v27 = vadd.f32 %v250_v22, %v107_v25  ;;  %v117_v42 = vmul.f32 0.5, %v113_v24 }
  0xcf   :  { %v121_v28 = vmul.f32 %v119_v26, %v113_v24  ;;  %v118_v29 = vmul.f32 0.044715, %v108_v27  ;;  %v116_v40 = vmul.f32 0.5, %v108_v27 }
  0xd1   :  { %v120_v30 = vmul.f32 %v118_v29, %v108_v27  ;;  %v123_v31 = vmul.f32 %v121_v28, %v113_v24 }
  0xd3   :  { %v122_v32 = vmul.f32 %v120_v30, %v108_v27  ;;  %v125_v33 = vadd.f32 %v123_v31, %v113_v24 }
  0xd5   :  { %v124_v34 = vadd.f32 %v122_v32, %v108_v27  ;;  %v127_v35 = vmul.f32 0.7978846, %v125_v33 }
  0xd7   :  { %v126_v36 = vmul.f32 0.7978846, %v124_v34  ;;  %327 = vtanh.f32 %v127_v35 }
  0xd9   :  { %329 = vtanh.f32 %v126_v36 }
  0xe4   :  { %v328_v37 = vpop.eup %327 }
  0xe5   :  { %v131_v39 = vadd.f32 1.0, %v328_v37 }
  0xe6   :  { %v330_v38 = vpop.eup %329 }
  0xe7   :  { %v130_v41 = vadd.f32 1.0, %v330_v38  ;;  %v133_v44 = vmul.f32 %v131_v39, %v117_v42 }
  0xe9   :  { %v132_v43 = vmul.f32 %v130_v41, %v116_v40 }
  0xeb   :  { %321 = vmatprep.mubr.f32.mxu1 %v132_v43 }
  0xec   :  { %322 = vmatmul.mubr.f32.vlgmr.msra.gmra.mxu1 %v133_v44 }
 0x1ac   :  { %v323_v46 = vpop.f32.mrf.mxu1 }
 0x1ad   :  { %v229_v47 = vadd.f32 %v323_v46, %v253_v45 }
 0x1ae   :  { %v223_v48 = vpop.f32.mrf.mxu1 }
 0x1af   :  { %233 = vst.msk [vmem:[#allocation2 + $0x8] sm:$0xff] %vm34_vm0, %v229_v47  ;;  %v224_v49 = vadd.f32 %v253_v45, %v223_v48 }
 0x1b1   :  { %232 = vst.msk [vmem:[#allocation2] sm:$0xff] %vm34_vm0, %v224_v49 }
 0x1b2   :  { %342 = shalt.err (!%p339_p4)
}
 0x1b3   :  { %s354_s13 = smov 128   ;;  %s355_s4 = smov 8  }
 0x1b4   :  { %245 = dma.vmem_to_hbm [thread:$0]  %s240_s11, 256, %s470_s5, [#allocation3], %s354_s13, %s354_s13, %s355_s4  }
 0x1b5   :  { %351 = dma.done.wait [#allocation3], 256  }
 0x1b6   :  { %352 = vsyncadd [#allocation3], 4294967040 }
 0x1b7   :  { %249 = vsyncpa [#allocation3], 1 }

// kernel: tpu_custom_call.1
= control target key start
LH: loop header
LB: loop body
LE: loop exit
PB: predicated region body
PF: predicated region fallthrough
CT: control target
= control target key end

     0   :  { %vm34_vm0 = vcmask 261120   ;;  %s465_s0 = inlined_call_operand.vmem [shape: f32[16,32], index: 0, kind: input, shape index: {}]   ;;  %s466_s1 = inlined_call_operand.vmem [shape: f32[32,128], index: 1, kind: input, shape index: {}]   ;;  %s467_s2 = inlined_call_operand.vmem [shape: f32[1,128], index: 2, kind: input, shape index: {}]   ;;  %s468_s3 = inlined_call_operand.vmem [shape: f32[128,32], index: 3, kind: input, shape index: {}]   ;;  %s469_s4 = inlined_call_operand.vmem [shape: f32[1,32], index: 4, kind: input, shape index: {}]   ;;  %s470_s5 = inlined_call_operand.hbm [shape: f32[16,32], index: 5, kind: output, shape index: {}]  }
   0x1   :  { %v26_v0 = vld [vmem:[%s466_s1 + $0x18] sm:$0xff]  ;;  %v25_v1 = vld [vmem:[%s466_s1 + $0x10] sm:$0xff]  ;;  %v21_v2 = vld [vmem:[%s465_s0] sm:$0xff] }
   0x2   :  { %278 = vmatprep.subr.mxu0 %v26_v0  ;;  %v24_v3 = vld [vmem:[%s466_s1 + $0x8] sm:$0xff]  ;;  %286 = vmatprep.mubr.msk.f32.mxu0 %vm34_vm0, %v21_v2 }
   0x3   :  { %279 = vmatpush3.msra.mxu0 %v26_v0 }
   0x4   :  { %10 = vsyncpa [#allocation3], 0  ;;  %280 = vmatprep.subr.mxu0 %v25_v1  ;;  %v23_v4 = vld [vmem:[%s466_s1] sm:$0xff]  ;;  %v22_v5 = vld [vmem:[%s465_s0 + $0x8] sm:$0xff]  ;;  %s353_s10 = smov [#allocation2]  }
   0x5   :  { %281 = vmatpush3.msra.mxu0 %v25_v1  ;;  %v149_v6 = vld [vmem:[%s468_s3 + $0x78] sm:$0xff]  ;;  %v148_v7 = vld [vmem:[%s468_s3 + $0x70] sm:$0xff]  ;;  %v147_v8 = vld [vmem:[%s468_s3 + $0x68] sm:$0xff]  ;;  %s239_s11 = sshll.u32 %s353_s10, 4  ;;  %s240_s11 = int_to_ptr.vmem [resolvable:$true] %s239_s11 }
   0x6   :  { %282 = vmatprep.subr.mxu0 %v24_v3  ;;  %289 = vmatprep.subr.mxu1 %v149_v6  ;;  %v146_v9 = vld [vmem:[%s468_s3 + $0x60] sm:$0xff]  ;;  %v145_v10 = vld [vmem:[%s468_s3 + $0x58] sm:$0xff]  ;;  %v144_v11 = vld [vmem:[%s468_s3 + $0x50] sm:$0xff]  ;;  %s331_s12 = scalar_lea.vmem %s240_s11, 256  ;;  %p336_p1 = scmp.lt.s32.totalorder %s240_s11, %s240_s11 }
   0x7   :  { %283 = vmatpush3.msra.mxu0 %v24_v3  ;;  %290 = vmatpush3.msra.mxu1 %v149_v6  ;;  %v143_v12 = vld [vmem:[%s468_s3 + $0x48] sm:$0xff]  ;;  %v142_v13 = vld [vmem:[%s468_s3 + $0x40] sm:$0xff]  ;;  %v141_v14 = vld [vmem:[%s468_s3 + $0x38] sm:$0xff]  ;;  %p332_p0 = scmp.ne.s32.totalorder %s240_s11, %s331_s12  ;;  %p337_p2 = scmp.lt.s32.totalorder %s331_s12, %s331_s12 }
   0x8   :  { %284 = vmatprep.subr.mxu0 %v23_v4  ;;  %291 = vmatprep.subr.mxu1 %v148_v7  ;;  %v140_v15 = vld [vmem:[%s468_s3 + $0x30] sm:$0xff]  ;;  %v139_v16 = vld [vmem:[%s468_s3 + $0x28] sm:$0xff]  ;;  %v138_v17 = vld [vmem:[%s468_s3 + $0x20] sm:$0xff] }
   0x9   :  { %285 = vmatpush3.msra.mxu0 %v23_v4  ;;  %292 = vmatpush3.msra.mxu1 %v148_v7  ;;  %v137_v18 = vld [vmem:[%s468_s3 + $0x18] sm:$0xff]  ;;  %v136_v19 = vld [vmem:[%s468_s3 + $0x10] sm:$0xff]  ;;  %v135_v20 = vld [vmem:[%s468_s3 + $0x8] sm:$0xff]  ;;  %p338_p3 = por %p337_p2, %p336_p1 }
   0xa   :  { %287 = vmatmul.mubr.msk.f32.vlgmr.msra.gmra.mxu0 %vm34_vm0, %v22_v5  ;;  %293 = vmatprep.subr.mxu1 %v147_v8  ;;  %v134_v21 = vld [vmem:[%s468_s3] sm:$0xff] }
   0xb   :  { %294 = vmatpush3.msra.mxu1 %v147_v8  ;;  %v250_v22 = vld [vmem:[%s467_s2] ss:$0 sm:$0xff]  ;;  %p339_p4 = pnand %p338_p3, %p332_p0 }
   0xc   :  { %295 = vmatprep.subr.mxu1 %v146_v9  ;;  %v253_v45 = vld [vmem:[%s469_s4] ss:$0 sm:$0xff] }
   0xd   :  { %296 = vmatpush3.msra.mxu1 %v146_v9 }
   0xe   :  { %297 = vmatprep.subr.mxu1 %v145_v10 }
   0xf   :  { %298 = vmatpush3.msra.mxu1 %v145_v10 }
  0x10   :  { %299 = vmatprep.subr.mxu1 %v144_v11 }
  0x11   :  { %300 = vmatpush3.msra.mxu1 %v144_v11 }
  0x12   :  { %301 = vmatprep.subr.mxu1 %v143_v12 }
  0x13   :  { %302 = vmatpush3.msra.mxu1 %v143_v12 }
  0x14   :  { %303 = vmatprep.subr.mxu1 %v142_v13 }
  0x15   :  { %304 = vmatpush3.msra.mxu1 %v142_v13 }
  0x16   :  { %305 = vmatprep.subr.mxu1 %v141_v14 }
  0x17   :  { %306 = vmatpush3.msra.mxu1 %v141_v14 }
  0x18   :  { %307 = vmatprep.subr.mxu1 %v140_v15 }
  0x19   :  { %308 = vmatpush3.msra.mxu1 %v140_v15 }
  0x1a   :  { %309 = vmatprep.subr.mxu1 %v139_v16 }
  0x1b   :  { %310 = vmatpush3.msra.mxu1 %v139_v16 }
  0x1c   :  { %311 = vmatprep.subr.mxu1 %v138_v17 }
  0x1d   :  { %312 = vmatpush3.msra.mxu1 %v138_v17 }
  0x1e   :  { %313 = vmatprep.subr.mxu1 %v137_v18 }
  0x1f   :  { %314 = vmatpush3.msra.mxu1 %v137_v18 }
  0x20   :  { %315 = vmatprep.subr.mxu1 %v136_v19 }
  0x21   :  { %316 = vmatpush3.msra.mxu1 %v136_v19 }
  0x22   :  { %317 = vmatprep.subr.mxu1 %v135_v20 }
  0x23   :  { %318 = vmatpush3.msra.mxu1 %v135_v20 }
  0x24   :  { %319 = vmatprep.subr.mxu1 %v134_v21 }
  0x25   :  { %320 = vmatpush3.msra.mxu1 %v134_v21 }
  0xca   :  { %v288_v23 = vpop.f32.mrf.mxu0 }
  0xcb   :  { %v113_v24 = vadd.f32 %v288_v23, %v250_v22 }
  0xcc   :  { %v107_v25 = vpop.f32.mrf.mxu0 }
  0xcd   :  { %v119_v26 = vmul.f32 0.044715, %v113_v24  ;;  %v108_v27 = vadd.f32 %v250_v22, %v107_v25  ;;  %v117_v42 = vmul.f32 0.5, %v113_v24 }
  0xcf   :  { %v121_v28 = vmul.f32 %v119_v26, %v113_v24  ;;  %v118_v29 = vmul.f32 0.044715, %v108_v27  ;;  %v116_v40 = vmul.f32 0.5, %v108_v27 }
  0xd1   :  { %v120_v30 = vmul.f32 %v118_v29, %v108_v27  ;;  %v123_v31 = vmul.f32 %v121_v28, %v113_v24 }
  0xd3   :  { %v122_v32 = vmul.f32 %v120_v30, %v108_v27  ;;  %v125_v33 = vadd.f32 %v123_v31, %v113_v24 }
  0xd5   :  { %v124_v34 = vadd.f32 %v122_v32, %v108_v27  ;;  %v127_v35 = vmul.f32 0.7978846, %v125_v33 }
  0xd7   :  { %v126_v36 = vmul.f32 0.7978846, %v124_v34  ;;  %327 = vtanh.f32 %v127_v35 }
  0xd9   :  { %329 = vtanh.f32 %v126_v36 }
  0xe4   :  { %v328_v37 = vpop.eup %327 }
  0xe5   :  { %v131_v39 = vadd.f32 1.0, %v328_v37 }
  0xe6   :  { %v330_v38 = vpop.eup %329 }
  0xe7   :  { %v130_v41 = vadd.f32 1.0, %v330_v38  ;;  %v133_v44 = vmul.f32 %v131_v39, %v117_v42 }
  0xe9   :  { %v132_v43 = vmul.f32 %v130_v41, %v116_v40 }
  0xeb   :  { %321 = vmatprep.mubr.f32.mxu1 %v132_v43 }
  0xec   :  { %322 = vmatmul.mubr.f32.vlgmr.msra.gmra.mxu1 %v133_v44 }
 0x1ac   :  { %v323_v46 = vpop.f32.mrf.mxu1 }
 0x1ad   :  { %v229_v47 = vadd.f32 %v323_v46, %v253_v45 }
 0x1ae   :  { %v223_v48 = vpop.f32.mrf.mxu1 }
 0x1af   :  { %233 = vst.msk [vmem:[#allocation2 + $0x8] sm:$0xff] %vm34_vm0, %v229_v47  ;;  %v224_v49 = vadd.f32 %v253_v45, %v223_v48 }
 0x1b1   :  { %232 = vst.msk [vmem:[#allocation2] sm:$0xff] %vm34_vm0, %v224_v49 }
 0x1b2   :  { %342 = shalt.err (!%p339_p4)
}
 0x1b3   :  { %s354_s13 = smov 128   ;;  %s355_s4 = smov 8  }
 0x1b4   :  { %245 = dma.vmem_to_hbm [thread:$0]  %s240_s11, 256, %s470_s5, [#allocation3], %s354_s13, %s354_s13, %s355_s4  }
 0x1b5   :  { %351 = dma.done.wait [#allocation3], 256  }
 0x1b6   :  { %352 = vsyncadd [#allocation3], 4294967040 }
 0x1b7   :  { %249 = vsyncpa [#allocation3], 1 }

</bundles_post_ra>
